<compile_context>
chip_gen: v7x
topology: tpu7x:2x2x1
jax: 0.10.0
libtpu: 0.0.40
codegen_flags: <defaults>
</compile_context>

<pallas_src>
import jax
import jax.numpy as jnp
from jax import lax
from jax.experimental import pallas as pl
from jax.experimental.pallas import tpu as pltpu

EPS = 1e-5          # PyTorch LayerNorm default
_MAX_TILE_M = 1024  # row-tile cap (keeps VMEM use tiny on all generations)


def _round_up(x, m):
    return ((x + m - 1) // m) * m


def _embedding_kernel(x_ref, w_ref, b_ref, g2_ref, bp_ref, o_ref):
    # x_ref: (TM, C) tile of the flattened (rows, C) input (any float dtype).
    x = x_ref[...].astype(jnp.float32)

    # --- LayerNorm over channels (affine folded into W'/b' in the wrapper) ---
    mu = jnp.mean(x, axis=-1, keepdims=True)
    xc = x - mu
    var = jnp.mean(xc * xc, axis=-1, keepdims=True)
    xn = xc * lax.rsqrt(var + EPS)

    # --- Linear (channels -> dim) with the LN1 affine pre-folded ---
    #     W' = g1[:, None] * W,  b' = b1 @ W + b
    h = jnp.dot(xn, w_ref[...], preferred_element_type=jnp.float32) + b_ref[...]

    # --- LayerNorm over dim; bias folded with the positional embedding ---
    mu2 = jnp.mean(h, axis=-1, keepdims=True)
    hc = h - mu2
    var2 = jnp.mean(hc * hc, axis=-1, keepdims=True)
    hn = hc * lax.rsqrt(var2 + EPS)

    o_ref[...] = hn * g2_ref[...] + bp_ref[...]   # bp = b2 + pos_embedding
    # Dropout: eval-mode identity (no-op).
    # TODO(synk): training-mode dropout (random masking) not implemented.


def embedding_forward(stmap, w, b, g1, b1, g2, b2, pos):
    """stmap: (B, N, C)  ->  (B, N, D)"""
    B, N, C = stmap.shape
    D = w.shape[1]
    rows = B * N

    # ---- one-time parameter folding (exact algebra, done by XLA outside kernel) ----
    w32 = w.astype(jnp.float32)
    w_f = g1.reshape(C, 1).astype(jnp.float32) * w32               # (C, D)
    b_f = (b1.reshape(1, C).astype(jnp.float32) @ w32
           + b.reshape(1, D).astype(jnp.float32))                  # (1, D)
    g2_f = g2.reshape(1, D).astype(jnp.float32)                    # (1, D)
    bp_f = (b2.reshape(1, D) + pos.reshape(1, D)).astype(jnp.float32)  # (1, D)

    # ---- row tiling: minimize grid steps, no divisor constraint on B*N ----
    # One tile when rows <= 1024 (single grid step for the small module sizes);
    # otherwise balanced ~<=1024-row tiles so the "parallel" axis has multiple
    # steps (shards across v7x's 2 TensorCores).
    num_tiles = -(-rows // _MAX_TILE_M)                 # ceil
    tile_m = _round_up(-(-rows // num_tiles), 8)        # ceil(rows/num_tiles) -> mult of 8
    rows_padded = _round_up(rows, tile_m)

    x2d = stmap.reshape(rows, C)                        # keep source dtype; cast in-kernel
    if rows_padded != rows:
        x2d = jnp.pad(x2d, ((0, rows_padded - rows), (0, 0)))

    out = pl.pallas_call(
        _embedding_kernel,
        out_shape=jax.ShapeDtypeStruct((rows_padded, D), jnp.float32),
        grid_spec=pltpu.PrefetchScalarGridSpec(
            num_scalar_prefetch=0,
            grid=(rows_padded // tile_m,),
            in_specs=[
                pl.BlockSpec((tile_m, C), lambda i: (i, 0)),   # input row tile
                pl.BlockSpec((C, D), lambda i: (0, 0)),        # folded linear weight
                pl.BlockSpec((1, D), lambda i: (0, 0)),        # folded linear bias
                pl.BlockSpec((1, D), lambda i: (0, 0)),        # LN2 gamma
                pl.BlockSpec((1, D), lambda i: (0, 0)),        # LN2 beta + pos
            ],
            out_specs=pl.BlockSpec((tile_m, D), lambda i: (i, 0)),
        ),
        compiler_params=pltpu.CompilerParams(
            dimension_semantics=("parallel",)),
    )(x2d, w_f, b_f, g2_f, bp_f)

    return out[:rows].reshape(B, N, D)


def _reference(stmap, w, b, g1, b1, g2, b2, pos):
    """Pure-JAX reference with the *unfolded* parameters (mirrors PyTorch)."""
    x = stmap.astype(jnp.float32)
    mu = jnp.mean(x, -1, keepdims=True)
    v = jnp.mean((x - mu) ** 2, -1, keepdims=True)
    x = (x - mu) / jnp.sqrt(v + EPS) * g1[0] + b1[0]
    x = x @ w + b[0]
    mu = jnp.mean(x, -1, keepdims=True)
    v = jnp.mean((x - mu) ** 2, -1, keepdims=True)
    x = (x - mu) / jnp.sqrt(v + EPS) * g2[0] + b2[0]
    return x + pos[0]


if __name__ == "__main__":
    # Module hyper-params (small, consistent with the forward):
    dim = 64          # embedding dim
    channels = 32     # input channels (last axis of stmap)
    num_clusters = 8  # sequence length / clusters
    B, N = 2, num_clusters

    key = jax.random.PRNGKey(0)
    ks = jax.random.split(key, 8)

    # Deterministic parameter init (synthetic, no checkpoint).
    w = jax.random.normal(ks[1], (channels, dim), jnp.float32) * (1.0 / channels ** 0.5)
    b = jax.random.normal(ks[2], (1, dim), jnp.float32) * 0.02
    g1 = 1.0 + 0.1 * jax.random.normal(ks[3], (1, channels), jnp.float32)
    b1 = 0.1 * jax.random.normal(ks[4], (1, channels), jnp.float32)
    g2 = 1.0 + 0.1 * jax.random.normal(ks[5], (1, dim), jnp.float32)
    b2 = 0.1 * jax.random.normal(ks[6], (1, dim), jnp.float32)
    # pos_embedding is (1, 1, dim); [:, :num_clusters] keeps its single row -> (1, dim)
    pos = jax.random.normal(ks[7], (1, dim), jnp.float32)

    # Case 1: the module's natural small shape (rows = 16 -> single grid step).
    stmap = jax.random.normal(ks[0], (B, N, channels), dtype=jnp.float32)
    out = jax.block_until_ready(embedding_forward(stmap, w, b, g1, b1, g2, b2, pos))
    ref = _reference(stmap, w, b, g1, b1, g2, b2, pos)
    assert out.shape == (B, N, dim)
    assert jnp.allclose(out, ref, atol=1e-4, rtol=1e-4)

    # Case 2: larger, non-power-of-two row count in bf16 — exercises the
    # padding path, a multi-step grid, and the in-kernel dtype cast.
    N2 = 600  # rows = 1200 -> 2 balanced tiles of 600 rows
    stmap2 = jax.random.normal(jax.random.PRNGKey(1), (B, N2, channels),
                               dtype=jnp.float32).astype(jnp.bfloat16)
    out2 = jax.block_until_ready(embedding_forward(stmap2, w, b, g1, b1, g2, b2, pos))
    ref2 = _reference(stmap2, w, b, g1, b1, g2, b2, pos)
    assert out2.shape == (B, N2, dim)
    assert jnp.allclose(out2, ref2, atol=1e-3, rtol=1e-3)

    print("KERNEL_OK")
</pallas_src>

<mosaic_0001>
module attributes {stable_mosaic.version = 11 : i64} {
  func.func @_embedding_kernel(%arg0: i32, %arg1: memref<16x32xf32, #tpu.memory_space<vmem>>, %arg2: memref<32x64xf32, #tpu.memory_space<vmem>>, %arg3: memref<1x64xf32, #tpu.memory_space<vmem>>, %arg4: memref<1x64xf32, #tpu.memory_space<vmem>>, %arg5: memref<1x64xf32, #tpu.memory_space<vmem>>, %arg6: memref<16x64xf32, #tpu.memory_space<vmem>>) attributes {dimension_semantics = [#tpu.dimension_semantics<parallel>], iteration_bounds = array<i64: 1>, scalar_prefetch = 0 : i64, scratch_operands = 0 : i64, tpu.core_type = #tpu.core_type<tc>, window_params = [{transform_indices = @transform_0, window_bounds = array<i64: 16, 32>}, {pipeline_mode = #tpu.pipeline_mode<synchronous>, transform_indices = @transform_1, window_bounds = array<i64: 32, 64>}, {pipeline_mode = #tpu.pipeline_mode<synchronous>, transform_indices = @transform_2, window_bounds = array<i64: 1, 64>}, {pipeline_mode = #tpu.pipeline_mode<synchronous>, transform_indices = @transform_3, window_bounds = array<i64: 1, 64>}, {pipeline_mode = #tpu.pipeline_mode<synchronous>, transform_indices = @transform_4, window_bounds = array<i64: 1, 64>}, {transform_indices = @transform_5, window_bounds = array<i64: 16, 64>}]} {
    %c0 = arith.constant 0 : index
    %c0_0 = arith.constant 0 : index
    %0 = vector.load %arg1[%c0, %c0_0] : memref<16x32xf32, #tpu.memory_space<vmem>>, vector<16x32xf32>
    %cst = arith.constant dense<0.000000e+00> : vector<16xf32>
    %1 = vector.multi_reduction <add>, %0, %cst [1] : vector<16x32xf32> to vector<16xf32>
    %2 = vector.shape_cast %1 : vector<16xf32> to vector<16x1xf32>
    %cst_1 = arith.constant 3.200000e+01 : f32
    %3 = vector.broadcast %cst_1 : f32 to vector<16x1xf32>
    %4 = arith.divf %2, %3 : vector<16x1xf32>
    %5 = vector.broadcast %4 : vector<16x1xf32> to vector<16x32xf32>
    %6 = arith.subf %0, %5 : vector<16x32xf32>
    %7 = arith.mulf %6, %6 : vector<16x32xf32>
    %cst_2 = arith.constant dense<0.000000e+00> : vector<16xf32>
    %8 = vector.multi_reduction <add>, %7, %cst_2 [1] : vector<16x32xf32> to vector<16xf32>
    %9 = vector.shape_cast %8 : vector<16xf32> to vector<16x1xf32>
    %cst_3 = arith.constant 3.200000e+01 : f32
    %10 = vector.broadcast %cst_3 : f32 to vector<16x1xf32>
    %11 = arith.divf %9, %10 : vector<16x1xf32>
    %cst_4 = arith.constant 9.99999974E-6 : f32
    %12 = vector.broadcast %cst_4 : f32 to vector<16x1xf32>
    %13 = arith.addf %11, %12 : vector<16x1xf32>
    %14 = math.rsqrt %13 : vector<16x1xf32>
    %15 = vector.broadcast %14 : vector<16x1xf32> to vector<16x32xf32>
    %16 = arith.mulf %6, %15 : vector<16x32xf32>
    %c0_5 = arith.constant 0 : index
    %c0_6 = arith.constant 0 : index
    %17 = vector.load %arg2[%c0_5, %c0_6] : memref<32x64xf32, #tpu.memory_space<vmem>>, vector<32x64xf32>
    %cst_7 = arith.constant dense<0.000000e+00> : vector<16x64xf32>
    %18 = tpu.matmul %16, %17, %cst_7 {dimension_numbers = #tpu.dot_dimension_numbers<[1], [0], [0], [1], [0, 0, 1, 1], [], []>} : vector<16x32xf32>, vector<32x64xf32>, vector<16x64xf32> -> vector<16x64xf32>
    %c0_8 = arith.constant 0 : index
    %c0_9 = arith.constant 0 : index
    %19 = vector.load %arg3[%c0_8, %c0_9] : memref<1x64xf32, #tpu.memory_space<vmem>>, vector<1x64xf32>
    %20 = vector.broadcast %19 : vector<1x64xf32> to vector<16x64xf32>
    %21 = arith.addf %18, %20 : vector<16x64xf32>
    %cst_10 = arith.constant dense<0.000000e+00> : vector<16xf32>
    %22 = vector.multi_reduction <add>, %21, %cst_10 [1] : vector<16x64xf32> to vector<16xf32>
    %23 = vector.shape_cast %22 : vector<16xf32> to vector<16x1xf32>
    %cst_11 = arith.constant 6.400000e+01 : f32
    %24 = vector.broadcast %cst_11 : f32 to vector<16x1xf32>
    %25 = arith.divf %23, %24 : vector<16x1xf32>
    %26 = vector.broadcast %25 : vector<16x1xf32> to vector<16x64xf32>
    %27 = arith.subf %21, %26 : vector<16x64xf32>
    %28 = arith.mulf %27, %27 : vector<16x64xf32>
    %cst_12 = arith.constant dense<0.000000e+00> : vector<16xf32>
    %29 = vector.multi_reduction <add>, %28, %cst_12 [1] : vector<16x64xf32> to vector<16xf32>
    %30 = vector.shape_cast %29 : vector<16xf32> to vector<16x1xf32>
    %cst_13 = arith.constant 6.400000e+01 : f32
    %31 = vector.broadcast %cst_13 : f32 to vector<16x1xf32>
    %32 = arith.divf %30, %31 : vector<16x1xf32>
    %cst_14 = arith.constant 9.99999974E-6 : f32
    %33 = vector.broadcast %cst_14 : f32 to vector<16x1xf32>
    %34 = arith.addf %32, %33 : vector<16x1xf32>
    %35 = math.rsqrt %34 : vector<16x1xf32>
    %36 = vector.broadcast %35 : vector<16x1xf32> to vector<16x64xf32>
    %37 = arith.mulf %27, %36 : vector<16x64xf32>
    %c0_15 = arith.constant 0 : index
    %c0_16 = arith.constant 0 : index
    %38 = vector.load %arg4[%c0_15, %c0_16] : memref<1x64xf32, #tpu.memory_space<vmem>>, vector<1x64xf32>
    %39 = vector.broadcast %38 : vector<1x64xf32> to vector<16x64xf32>
    %40 = arith.mulf %37, %39 : vector<16x64xf32>
    %c0_17 = arith.constant 0 : index
    %c0_18 = arith.constant 0 : index
    %41 = vector.load %arg5[%c0_17, %c0_18] : memref<1x64xf32, #tpu.memory_space<vmem>>, vector<1x64xf32>
    %42 = vector.broadcast %41 : vector<1x64xf32> to vector<16x64xf32>
    %43 = arith.addf %40, %42 : vector<16x64xf32>
    %c0_19 = arith.constant 0 : index
    %c0_20 = arith.constant 0 : index
    %44 = vector.load %arg6[%c0_19, %c0_20] : memref<16x64xf32, #tpu.memory_space<vmem>>, vector<16x64xf32>
    tpu.vector_store %arg6[%c0_19, %c0_20], %43 {strides = array<i32>} : memref<16x64xf32, #tpu.memory_space<vmem>>, vector<16x64xf32>,
    return
  }
  func.func @transform_0(%arg0: i32) -> (i32, i32) {
    %c0_i32 = arith.constant 0 : i32
    %c0_i32_0 = arith.constant 0 : i32
    return %arg0, %c0_i32 : i32, i32
  }
  func.func @transform_1(%arg0: i32) -> (i32, i32) {
    %c0_i32 = arith.constant 0 : i32
    %c0_i32_0 = arith.constant 0 : i32
    %c0_i32_1 = arith.constant 0 : i32
    return %c0_i32, %c0_i32_0 : i32, i32
  }
  func.func @transform_2(%arg0: i32) -> (i32, i32) {
    %c0_i32 = arith.constant 0 : i32
    %c0_i32_0 = arith.constant 0 : i32
    %c0_i32_1 = arith.constant 0 : i32
    return %c0_i32, %c0_i32_0 : i32, i32
  }
  func.func @transform_3(%arg0: i32) -> (i32, i32) {
    %c0_i32 = arith.constant 0 : i32
    %c0_i32_0 = arith.constant 0 : i32
    %c0_i32_1 = arith.constant 0 : i32
    return %c0_i32, %c0_i32_0 : i32, i32
  }
  func.func @transform_4(%arg0: i32) -> (i32, i32) {
    %c0_i32 = arith.constant 0 : i32
    %c0_i32_0 = arith.constant 0 : i32
    %c0_i32_1 = arith.constant 0 : i32
    return %c0_i32, %c0_i32_0 : i32, i32
  }
  func.func @transform_5(%arg0: i32) -> (i32, i32) {
    %c0_i32 = arith.constant 0 : i32
    %c0_i32_0 = arith.constant 0 : i32
    return %arg0, %c0_i32 : i32, i32
  }
}

</mosaic_0001>

<bundles_post_ra>
// kernel: tpu_custom_call.1
= control target key start
LH: loop header
LB: loop body
LE: loop exit
PB: predicated region body
PF: predicated region fallthrough
CT: control target
= control target key end

     0   :  { %10 = vsyncpa [#allocation3], 0  ;;  %s453_s0 = inlined_call_operand.hbm [shape: f32[16,32], index: 0, kind: input, shape index: {}]   ;;  %s454_s1 = inlined_call_operand.hbm [shape: f32[32,64], index: 1, kind: input, shape index: {}]   ;;  %s455_s2 = inlined_call_operand.vmem [shape: f32[1,64], index: 2, kind: input, shape index: {}]   ;;  %s456_s3 = inlined_call_operand.vmem [shape: f32[1,64], index: 3, kind: input, shape index: {}]   ;;  %s457_s4 = inlined_call_operand.vmem [shape: f32[1,64], index: 4, kind: input, shape index: {}]   ;;  %s458_s5 = inlined_call_operand.hbm [shape: f32[16,64], index: 5, kind: output, shape index: {}]  }
   0x1   :  { %11 = vsyncpa [#allocation6], 0 }
   0x2   :  { %12 = vsyncpa [#allocation4], 0  ;;  %s352_s18 = smov [#allocation2]   ;;  %s280_s22 = scalar_lea.hbm %s453_s0, 256 }
   0x3   :  { %s18_s19 = sshll.u32 %s352_s18, 4  ;;  %p281_p0 = scmp.ne.s32.totalorder %s453_s0, %s280_s22  ;;  %s19_s19 = int_to_ptr.vmem [resolvable:$true] %s18_s19 }
   0x4   :  { %p284_p1 = scmp.lt.u32.totalorder %s280_s22, %s453_s0 }
   0x6   :  { %p286_p2 = pnand %p284_p1, %p281_p0 }
   0x8   :  { %289 = shalt.err (!%p286_p2)
}
   0x9   :  { %s290_s27 = scalar_lea.vmem %s19_s19, 256  ;;  %p295_p4 = scmp.lt.s32.totalorder %s19_s19, %s19_s19 }
   0xa   :  { %p291_p3 = scmp.ne.s32.totalorder %s19_s19, %s290_s27  ;;  %p296_p5 = scmp.lt.s32.totalorder %s290_s27, %s290_s27 }
   0xc   :  { %p297_p6 = por %p296_p5, %p295_p4 }
   0xe   :  { %p298_p7 = pnand %p297_p6, %p291_p3 }
  0x10   :  { %301 = shalt.err (!%p298_p7)
}
  0x11   :  { %s353_s28 = smov 128   ;;  %s354_s29 = smov 8  }
  0x12   :  { %24 = dma.hbm_to_vmem [thread:$0]  %s453_s0, 256, %s19_s19, [#allocation3], %s353_s28, %s353_s28, %s354_s29  }
  0x13   :  { %s355_s7 = smov [#allocation5]   ;;  %s302_s11 = scalar_lea.hbm %s454_s1, 512 }
  0x14   :  { %s30_s8 = sshll.u32 %s355_s7, 4  ;;  %p303_p8 = scmp.ne.s32.totalorder %s454_s1, %s302_s11  ;;  %s31_s8 = int_to_ptr.vmem [resolvable:$true] %s30_s8 }
  0x15   :  { %p306_p9 = scmp.lt.u32.totalorder %s302_s11, %s454_s1 }
  0x17   :  { %p308_p10 = pnand %p306_p9, %p303_p8 }
  0x19   :  { %311 = shalt.err (!%p308_p10)
}
  0x1a   :  { %s312_s16 = scalar_lea.vmem %s31_s8, 512  ;;  %p317_p12 = scmp.lt.s32.totalorder %s31_s8, %s31_s8 }
  0x1b   :  { %p313_p11 = scmp.ne.s32.totalorder %s31_s8, %s312_s16  ;;  %p318_p13 = scmp.lt.s32.totalorder %s312_s16, %s312_s16 }
  0x1d   :  { %p319_p0 = por %p318_p13, %p317_p12 }
  0x1f   :  { %p320_p1 = pnand %p319_p0, %p313_p11 }
  0x21   :  { %323 = shalt.err (!%p320_p1)
}
  0x22   :  { %36 = dma.hbm_to_vmem [thread:$0]  %s454_s1, 512, %s31_s8, [#allocation6], %s353_s28, %s353_s28, %s354_s29  }
  0x23   :  { %346 = dma.done.wait [#allocation3], 256  }
  0x24   :  { %347 = vsyncadd [#allocation3], 4294967040 }
  0x25   :  { %348 = dma.done.wait [#allocation6], 512  }
  0x26   :  { %349 = vsyncadd [#allocation6], 4294966784  ;;  %vm51_vm0 = vcmask 261120   ;;  %v49_v0 = vld [vmem:[#allocation2] sm:$0xff]  ;;  %v50_v1 = vld [vmem:[#allocation2 + $0x8] sm:$0xff]  ;;  %vm171_vm1 = vcmask 523264  }
  0x27   :  { %v52_v2 = vsel %vm51_vm0, %v49_v0, 0.0  ;;  %v55_v3 = vsel %vm51_vm0, %v50_v1, 0.0  ;;  %v79_v14 = vld [vmem:[#allocation5] sm:$0xff]  ;;  %v80_v15 = vld [vmem:[#allocation5 + $0x8] sm:$0xff]  ;;  %v81_v16 = vld [vmem:[#allocation5 + $0x10] sm:$0xff]  ;;  %s356_s22 = smov [#allocation7]  }
  0x28   :  { %53 = vadd.xlane.f32.xlu0 %v52_v2  ;;  %v259_v17 = vpack.c.bf16 %v80_v15, %v79_v14  ;;  %v82_v18 = vld [vmem:[#allocation5 + $0x18] sm:$0xff]  ;;  %v237_v30 = vld [vmem:[%s455_s2] ss:$0 sm:$0xff]  ;;  %s224_s23 = sshll.u32 %s356_s22, 4  ;;  %s225_s23 = int_to_ptr.vmem [resolvable:$true] %s224_s23 }
  0x29   :  { %v263_v19 = vpack.c.bf16 %v82_v18, %v81_v16  ;;  %v240_v54 = vld [vmem:[%s456_s3] ss:$0 sm:$0xff]  ;;  %s324_s24 = scalar_lea.vmem %s225_s23, 256  ;;  %p329_p3 = scmp.lt.s32.totalorder %s225_s23, %s225_s23 }
  0x2a   :  { %260 = vmatprep.subr.bf16.mxu0 %v259_v17  ;;  %v241_v58 = vld [vmem:[%s457_s4] ss:$0 sm:$0xff]  ;;  %p325_p2 = scmp.ne.s32.totalorder %s225_s23, %s324_s24  ;;  %p330_p4 = scmp.lt.s32.totalorder %s324_s24, %s324_s24 }
  0x2b   :  { %262 = vmatpush3.bf16.msra.mxu0 %v259_v17 }
  0x2c   :  { %56 = vadd.xlane.f32.xlu0 %v55_v3  ;;  %264 = vmatprep.subr.bf16.mxu0 %v263_v19  ;;  %p331_p5 = por %p330_p4, %p329_p3 }
  0x2e   :  { %p332_p6 = pnand %p331_p5, %p325_p2 }
  0x2f   :  { %266 = vmatpush3.bf16.msra.mxu0 %v263_v19 }
  0xb5   :  { %v54_v4 = vpop.xlane.xlu0 %53 }
  0xb6   :  { %v59_v5 = vmul.f32 0.03125, %v54_v4 }
  0xb8   :  { %v61_v6 = vsub.f32 %v49_v0, %v59_v5 }
  0xb9   :  { %v57_v7 = vpop.xlane.xlu0 %56 }
  0xba   :  { %v60_v8 = vmul.f32 0.03125, %v57_v7  ;;  %v63_v9 = vmul.f32 %v61_v6, %v61_v6 }
  0xbc   :  { %v62_v10 = vsub.f32 %v50_v1, %v60_v8  ;;  %v65_v11 = vsel %vm51_vm0, %v63_v9, 0.0 }
  0xbd   :  { %66 = vadd.xlane.f32.xlu1 %v65_v11 }
  0xbe   :  { %v64_v12 = vmul.f32 %v62_v10, %v62_v10 }
  0xc0   :  { %v68_v13 = vsel %vm51_vm0, %v64_v12, 0.0 }
  0xc1   :  { %69 = vadd.xlane.f32.xlu1 %v68_v13 }
 0x14a   :  { %v67_v20 = vpop.xlane.xlu1 %66 }
 0x14b   :  { %v71_v21 = vmul.f32 0.03125, %v67_v20 }
 0x14d   :  { %v73_v22 = vadd.f32 1e-05, %v71_v21 }
 0x14e   :  { %v70_v23 = vpop.xlane.xlu1 %69 }
 0x14f   :  { %272 = vrsqrt.f32 %v73_v22  ;;  %v72_v24 = vmul.f32 0.03125, %v70_v23 }
 0x151   :  { %v74_v25 = vadd.f32 1e-05, %v72_v24 }
 0x153   :  { %274 = vrsqrt.f32 %v74_v25 }
 0x159   :  { %v273_v26 = vpop.eup %272 }
 0x15a   :  { %v77_v27 = vmul.f32 %v273_v26, %v61_v6 }
 0x15c   :  { %256 = vmatprep.mubr.msk.f32.mxu0 %vm51_vm0, %v77_v27 }
 0x15d   :  { %v275_v28 = vpop.eup %274 }
 0x15e   :  { %v78_v29 = vmul.f32 %v275_v28, %v62_v10 }
 0x160   :  { %257 = vmatmul.mubr.msk.f32.vlgmr.msra.gmra.mrb[0].mxu0 %vm51_vm0, %v78_v29 }
 0x233   :  { %v258_v31 = vpop.f32.mrb[0].mxu0 }
 0x234   :  { %v168_v32 = vadd.f32 %v258_v31, %v237_v30  ;;  %v162_v33 = vpop.f32.mrb[1].mxu0 }
 0x235   :  { %v163_v34 = vadd.f32 %v237_v30, %v162_v33 }
 0x236   :  { %v175_v35 = vsel %vm171_vm1, %v168_v32, 0.0 }
 0x237   :  { %176 = vadd.xlane.f32.xlu1 %v175_v35  ;;  %v172_v36 = vsel %vm171_vm1, %v163_v34, 0.0 }
 0x238   :  { %173 = vadd.xlane.f32.xlu0 %v172_v36 }
 0x2c4   :  { %v177_v37 = vpop.xlane.xlu1 %176 }
 0x2c5   :  { %v180_v38 = vmul.f32 0.015625, %v177_v37  ;;  %v174_v39 = vpop.xlane.xlu0 %173 }
 0x2c6   :  { %v179_v40 = vmul.f32 0.015625, %v174_v39 }
 0x2c7   :  { %v182_v41 = vsub.f32 %v168_v32, %v180_v38 }
 0x2c8   :  { %v181_v42 = vsub.f32 %v163_v34, %v179_v40 }
 0x2c9   :  { %v184_v43 = vmul.f32 %v182_v41, %v182_v41 }
 0x2ca   :  { %v183_v44 = vmul.f32 %v181_v42, %v181_v42 }
 0x2cb   :  { %v188_v45 = vsel %vm171_vm1, %v184_v43, 0.0 }
 0x2cc   :  { %189 = vadd.xlane.f32.xlu1 %v188_v45  ;;  %v185_v46 = vsel %vm171_vm1, %v183_v44, 0.0 }
 0x2cd   :  { %186 = vadd.xlane.f32.xlu0 %v185_v46 }
 0x359   :  { %v190_v47 = vpop.xlane.xlu1 %189 }
 0x35a   :  { %v192_v48 = vmul.f32 0.015625, %v190_v47  ;;  %v187_v49 = vpop.xlane.xlu0 %186 }
 0x35b   :  { %v191_v50 = vmul.f32 0.015625, %v187_v49 }
 0x35c   :  { %v194_v51 = vadd.f32 1e-05, %v192_v48 }
 0x35d   :  { %v193_v52 = vadd.f32 1e-05, %v191_v50 }
 0x35e   :  { %276 = vrsqrt.f32 %v194_v51 }
 0x35f   :  { %278 = vrsqrt.f32 %v193_v52 }
 0x368   :  { %v277_v53 = vpop.eup %276 }
 0x369   :  { %v279_v55 = vpop.eup %278  ;;  %v198_v56 = vmul.f32 %v277_v53, %v182_v41 }
 0x36a   :  { %v197_v57 = vmul.f32 %v279_v55, %v181_v42 }
 0x36b   :  { %v207_v59 = vmul.f32 %v240_v54, %v198_v56 }
 0x36c   :  { %v206_v60 = vmul.f32 %v240_v54, %v197_v57 }
 0x36d   :  { %v216_v61 = vadd.f32 %v241_v58, %v207_v59 }
 0x36e   :  { %v215_v62 = vadd.f32 %v241_v58, %v206_v60 }
 0x36f   :  { %218 = vst.msk [vmem:[#allocation7 + $0x8] sm:$0xff] %vm171_vm1, %v216_v61 }
 0x370   :  { %217 = vst.msk [vmem:[#allocation7] sm:$0xff] %vm171_vm1, %v215_v62 }
 0x371   :  { %335 = shalt.err (!%p332_p6)
}
 0x372   :  { %s336_s25 = scalar_lea.hbm %s458_s5, 256 }
 0x373   :  { %p337_p7 = scmp.ne.s32.totalorder %s458_s5, %s336_s25  ;;  %p340_p8 = scmp.lt.u32.totalorder %s336_s25, %s458_s5 }
 0x375   :  { %p342_p9 = pnand %p340_p8, %p337_p7 }
 0x377   :  { %345 = shalt.err (!%p342_p9)
}
 0x378   :  { %230 = dma.vmem_to_hbm [thread:$0]  %s225_s23, 256, %s458_s5, [#allocation4], %s353_s28, %s353_s28, %s354_s29  }
 0x379   :  { %350 = dma.done.wait [#allocation4], 256  }
 0x37a   :  { %351 = vsyncadd [#allocation4], 4294967040 }
 0x37b   :  { %234 = vsyncpa [#allocation3], 1 }
 0x37c   :  { %235 = vsyncpa [#allocation6], 1 }
 0x37d   :  { %236 = vsyncpa [#allocation4], 1 }

</bundles_post_ra>
